<compile_context>
chip_gen: v5e
topology: v5e:2x2
jax: 0.10.0
libtpu: 0.0.40
codegen_flags: <defaults>
</compile_context>

<pallas_src>
import jax
import jax.numpy as jnp
from jax.experimental import pallas as pl
from jax.experimental.pallas import tpu as pltpu


def _round_up(x, m):
    return ((x + m - 1) // m) * m


def _head_kernel(x_ref, w1_ref, b1_ref, w2_ref, b2_ref, o_ref, acc_ref):
    """One (TB, TK) chunk of CLS rows x one (TK, Hp) chunk of W_dense.

    Grid = (batch tiles ["parallel"], K chunks ["arbitrary", last]).
    acc_ref is a (TB, Hp) f32 accumulator carried across the K axis.
    Dropout layers are identity in eval mode and omitted.
    """
    k = pl.program_id(1)

    @pl.when(k == 0)
    def _init():
        acc_ref[...] = jnp.zeros_like(acc_ref)

    # First matmul, accumulated over K chunks (f32 MXU accumulation).
    x = x_ref[...].astype(w1_ref.dtype)            # bf16 MXU path if weights are bf16
    acc_ref[...] += jnp.dot(x, w1_ref[...], preferred_element_type=jnp.float32)

    @pl.when(k == pl.num_programs(1) - 1)
    def _finalize():
        h = jnp.tanh(acc_ref[...] + b1_ref[...].astype(jnp.float32))   # f32 bias + tanh (EUP)
        h = h.astype(w2_ref.dtype)
        out = jnp.dot(h, w2_ref[...], preferred_element_type=jnp.float32)
        out = out + b2_ref[...].astype(jnp.float32)
        o_ref[...] = out.astype(o_ref.dtype)


def prepare_head_params(w_dense, b_dense, w_out, b_out, *, compute_dtype=None):
    """One-time parameter preparation (hoisted out of the per-call path).

    Weights arrive in the already-transposed layout (x @ W):
      w_dense: [H, H], b_dense: [H], w_out: [H, L], b_out: [L]
    Pads H and L to multiples of 128 (full 128-lane vregs, lane-dense output)
    and optionally casts the weight matrices to `compute_dtype` (e.g. bf16).
    Zero padding is exact: padded h columns are tanh(0 + 0) = 0 and hit
    zero-padded W_out rows, so the logits are unchanged.
    """
    H = w_dense.shape[0]
    L = w_out.shape[1]
    Hp = _round_up(H, 128)
    Lp = _round_up(L, 128)

    w1 = jnp.pad(w_dense, ((0, Hp - H), (0, Hp - H)))
    b1 = jnp.pad(b_dense, (0, Hp - H)).reshape(1, Hp)
    w2 = jnp.pad(w_out, ((0, Hp - H), (0, Lp - L)))
    b2 = jnp.pad(b_out, (0, Lp - L)).reshape(1, Lp)
    if compute_dtype is not None:
        w1 = w1.astype(compute_dtype)
        w2 = w2.astype(compute_dtype)
    return {"w1": w1, "b1": b1, "w2": w2, "b2": b2,
            "H": H, "L": L, "Hp": Hp, "Lp": Lp}


def _pick_batch_tile(B):
    # >= 2 grid steps on the (parallel) batch axis whenever B > 8 so both v7x
    # TensorCores get work; M tile capped at 256 (v6e/v7x MXU height).
    if B <= 8:
        return B
    if B <= 512:
        return max(8, _round_up(pl.cdiv(B, 2), 8))
    return 256


def _pick_k_tile(Hp):
    # Largest K chunk (<= 512) that divides the padded hidden dim exactly, so
    # the reduction never reads a partially out-of-bounds W_dense block.
    for tk in (512, 256, 128):
        if Hp % tk == 0:
            return tk
    return 128


def multi_label_roberta_head(features, params, *, special_token_type=False,
                             out_dtype=None, batch_tile=None, k_tile=None):
    """features: [B, S, H] (or [B, H] if special_token_type). Returns [B, L]."""
    H, L, Hp, Lp = params["H"], params["L"], params["Hp"], params["Lp"]
    w1, b1, w2, b2 = params["w1"], params["b1"], params["w2"], params["b2"]

    if special_token_type:
        B = features.shape[0]
        x2d = features if H == Hp else jnp.pad(features, ((0, 0), (0, Hp - H)))
    else:
        B, S, _ = features.shape
        if H == Hp:
            # Fold the CLS-token select into the BlockSpec: view as [B, S*H];
            # the x index_map only touches columns [0, H) = the CLS token, so
            # only CLS rows are ever DMA'd (no wrapper-side slice pass).
            x2d = features.reshape(B, S * H)
        else:
            # Unaligned toy H: slice CLS and zero-pad to a full 128-lane width
            # (tiny [B, H] array; the weights dominate the HBM bytes anyway).
            x2d = jnp.pad(features[:, 0, :], ((0, 0), (0, Hp - H)))

    out_dtype = features.dtype if out_dtype is None else out_dtype
    TB = _pick_batch_tile(B) if batch_tile is None else batch_tile
    TK = _pick_k_tile(Hp) if k_tile is None else k_tile
    assert Hp % TK == 0 and TK % 128 == 0

    grid = (pl.cdiv(B, TB), Hp // TK)

    # Advisory cost estimate with per-operand itemsizes.
    def nbytes(a):
        return a.size * jnp.dtype(a.dtype).itemsize
    cost = pl.CostEstimate(
        flops=int(2 * B * Hp * (Hp + Lp)),
        transcendentals=int(B * Hp),
        bytes_accessed=int(B * Hp * jnp.dtype(features.dtype).itemsize
                           + nbytes(w1) + nbytes(b1) + nbytes(w2) + nbytes(b2)
                           + B * Lp * jnp.dtype(out_dtype).itemsize),
    )

    resident = dict(pipeline_mode=pl.Buffered(1))   # constant-index: single buffer

    out = pl.pallas_call(
        _head_kernel,
        out_shape=jax.ShapeDtypeStruct((B, Lp), out_dtype),
        grid=grid,
        in_specs=[
            pl.BlockSpec((TB, TK), lambda i, k: (i, k)),               # x K-chunk (CLS rows)
            pl.BlockSpec((TK, Hp), lambda i, k: (k, 0)),               # W_dense K-chunk (DMA under MXU)
            pl.BlockSpec((1, Hp), lambda i, k: (0, 0), **resident),    # b_dense: VMEM-resident
            pl.BlockSpec((Hp, Lp), lambda i, k: (0, 0), **resident),   # W_out:   VMEM-resident
            pl.BlockSpec((1, Lp), lambda i, k: (0, 0), **resident),    # b_out:   VMEM-resident
        ],
        out_specs=pl.BlockSpec((TB, Lp), lambda i, k: (i, 0)),         # lane-dense (Lp % 128 == 0)
        scratch_shapes=[pltpu.VMEM((TB, Hp), jnp.float32)],            # f32 accumulator across K
        compiler_params=pltpu.CompilerParams(
            dimension_semantics=("parallel", "arbitrary"),
            vmem_limit_bytes=32 << 20,
        ),
        cost_estimate=cost,
    )(x2d, w1, b1, w2, b2)

    return out[:, :L] if Lp > L else out


if __name__ == "__main__":
    # TODO(synk): train-mode dropout not implemented (eval-mode identity only);
    # would use pltpu.prng_seed / pltpu.prng_random_bits if needed.

    def reference(features, w_dense, b_dense, w_out, b_out, special_token_type=False):
        x = features if special_token_type else features[:, 0, :]
        return jnp.tanh(x @ w_dense + b_dense) @ w_out + b_out

    def make_case(key, batch, seq, hidden, labels, dtype=jnp.float32):
        k_feat, k_w1, k_b1, k_w2, k_b2 = jax.random.split(key, 5)
        bound = 1.0 / (hidden ** 0.5)
        features = jax.random.normal(k_feat, (batch, seq, hidden), dtype=dtype)
        w_dense = jax.random.uniform(k_w1, (hidden, hidden), dtype, -bound, bound)
        b_dense = jax.random.uniform(k_b1, (hidden,), dtype, -bound, bound)
        w_out = jax.random.uniform(k_w2, (hidden, labels), dtype, -bound, bound)
        b_out = jax.random.uniform(k_b2, (labels,), dtype, -bound, bound)
        return features, w_dense, b_dense, w_out, b_out

    key = jax.random.PRNGKey(0)
    k1, k2 = jax.random.split(key, 2)

    # --- Case 1: module's toy config (unaligned H -> padded to 128 lanes) ---
    batch, seq, hidden, num_labels = 2, 8, 32, 6
    feats, w_d, b_d, w_o, b_o = make_case(k1, batch, seq, hidden, num_labels)
    params = prepare_head_params(w_d, b_d, w_o, b_o)

    logits = multi_label_roberta_head(feats, params, special_token_type=False)
    jax.block_until_ready(logits)
    ref = reference(feats, w_d, b_d, w_o, b_o)
    assert logits.shape == (batch, num_labels)
    assert jnp.allclose(logits, ref, atol=1e-5), "case1 mismatch vs reference"

    # special_token_type=True path (features already [B, H])
    logits_st = multi_label_roberta_head(feats[:, 0, :], params, special_token_type=True)
    jax.block_until_ready(logits_st)
    assert jnp.allclose(logits_st, ref, atol=1e-5), "case1 special-token mismatch"

    # --- Case 2: aligned H, K-split accumulation + partial batch tile ---
    # hidden=256 with k_tile=128 -> 2 K chunks; batch=10 with TB=8 -> 2 batch
    # steps (last one partial); CLS select folded via the [B, S*H] view.
    b2_, s2_, h2_, l2_ = 10, 4, 256, 6
    feats2, w_d2, b_d2, w_o2, b_o2 = make_case(k2, b2_, s2_, h2_, l2_)
    params2 = prepare_head_params(w_d2, b_d2, w_o2, b_o2)
    logits2 = multi_label_roberta_head(feats2, params2, k_tile=128)
    jax.block_until_ready(logits2)
    ref2 = reference(feats2, w_d2, b_d2, w_o2, b_o2)
    assert logits2.shape == (b2_, l2_)
    assert jnp.allclose(logits2, ref2, atol=1e-4, rtol=1e-4), "case2 mismatch vs reference"

    # --- Case 3: bf16 MXU path (weights stored/streamed as bf16, f32 accum) ---
    params_bf16 = prepare_head_params(w_d, b_d, w_o, b_o, compute_dtype=jnp.bfloat16)
    logits_bf16 = multi_label_roberta_head(feats, params_bf16, out_dtype=jnp.float32)
    jax.block_until_ready(logits_bf16)
    assert jnp.allclose(logits_bf16, ref, atol=5e-2, rtol=5e-2), "case3 bf16 mismatch"

    print("KERNEL_OK")
</pallas_src>

<mosaic_0001>
module attributes {stable_mosaic.version = 11 : i64} {
  func.func @_head_kernel(%arg0: i32, %arg1: i32, %arg2: memref<2x128xf32, #tpu.memory_space<vmem>>, %arg3: memref<128x128xf32, #tpu.memory_space<vmem>>, %arg4: memref<1x128xf32, #tpu.memory_space<vmem>>, %arg5: memref<128x128xf32, #tpu.memory_space<vmem>>, %arg6: memref<1x128xf32, #tpu.memory_space<vmem>>, %arg7: memref<2x128xf32, #tpu.memory_space<vmem>>, %arg8: memref<2x128xf32, #tpu.memory_space<vmem>>) attributes {dimension_semantics = [#tpu.dimension_semantics<parallel>, #tpu.dimension_semantics<arbitrary>], iteration_bounds = array<i64: 1, 1>, scalar_prefetch = 0 : i64, scratch_operands = 1 : i64, tpu.core_type = #tpu.core_type<tc>, window_params = [{transform_indices = @transform_0, window_bounds = array<i64: 2, 128>}, {transform_indices = @transform_1, window_bounds = array<i64: 128, 128>}, {pipeline_mode = #tpu.pipeline_mode<synchronous>, transform_indices = @transform_2, window_bounds = array<i64: 1, 128>}, {pipeline_mode = #tpu.pipeline_mode<synchronous>, transform_indices = @transform_3, window_bounds = array<i64: 128, 128>}, {pipeline_mode = #tpu.pipeline_mode<synchronous>, transform_indices = @transform_4, window_bounds = array<i64: 1, 128>}, {transform_indices = @transform_5, window_bounds = array<i64: 2, 128>}]} {
    %c0_i32 = arith.constant 0 : i32
    %0 = arith.cmpi eq, %arg1, %c0_i32 : i32
    %1 = arith.extui %0 : i1 to i32
    %c0_i32_0 = arith.constant 0 : i32
    %2 = arith.cmpi ne, %1, %c0_i32_0 : i32
    scf.if %2 {
      %cst_10 = arith.constant 0.000000e+00 : f32
      %12 = vector.broadcast %cst_10 : f32 to vector<2x128xf32>
      %c0_11 = arith.constant 0 : index
      %c0_12 = arith.constant 0 : index
      %13 = vector.load %arg8[%c0_11, %c0_12] : memref<2x128xf32, #tpu.memory_space<vmem>>, vector<2x128xf32>
      tpu.vector_store %arg8[%c0_11, %c0_12], %12 {strides = array<i32>} : memref<2x128xf32, #tpu.memory_space<vmem>>, vector<2x128xf32>,
    } else {
    }
    %c0 = arith.constant 0 : index
    %c0_1 = arith.constant 0 : index
    %3 = vector.load %arg2[%c0, %c0_1] : memref<2x128xf32, #tpu.memory_space<vmem>>, vector<2x128xf32>
    %c0_2 = arith.constant 0 : index
    %c0_3 = arith.constant 0 : index
    %4 = vector.load %arg8[%c0_2, %c0_3] : memref<2x128xf32, #tpu.memory_space<vmem>>, vector<2x128xf32>
    %c0_4 = arith.constant 0 : index
    %c0_5 = arith.constant 0 : index
    %5 = vector.load %arg3[%c0_4, %c0_5] : memref<128x128xf32, #tpu.memory_space<vmem>>, vector<128x128xf32>
    %cst = arith.constant dense<0.000000e+00> : vector<2x128xf32>
    %6 = tpu.matmul %3, %5, %cst {dimension_numbers = #tpu.dot_dimension_numbers<[1], [0], [0], [1], [0, 0, 1, 1], [], []>} : vector<2x128xf32>, vector<128x128xf32>, vector<2x128xf32> -> vector<2x128xf32>
    %7 = arith.addf %4, %6 : vector<2x128xf32>
    %c0_6 = arith.constant 0 : index
    %c0_7 = arith.constant 0 : index
    %8 = vector.load %arg8[%c0_6, %c0_7] : memref<2x128xf32, #tpu.memory_space<vmem>>, vector<2x128xf32>
    tpu.vector_store %arg8[%c0_6, %c0_7], %7 {strides = array<i32>} : memref<2x128xf32, #tpu.memory_space<vmem>>, vector<2x128xf32>,
    %c0_i32_8 = arith.constant 0 : i32
    %9 = arith.cmpi eq, %arg1, %c0_i32_8 : i32
    %10 = arith.extui %9 : i1 to i32
    %c0_i32_9 = arith.constant 0 : i32
    %11 = arith.cmpi ne, %10, %c0_i32_9 : i32
    scf.if %11 {
      %c0_10 = arith.constant 0 : index
      %c0_11 = arith.constant 0 : index
      %12 = vector.load %arg8[%c0_10, %c0_11] : memref<2x128xf32, #tpu.memory_space<vmem>>, vector<2x128xf32>
      %c0_12 = arith.constant 0 : index
      %c0_13 = arith.constant 0 : index
      %13 = vector.load %arg4[%c0_12, %c0_13] : memref<1x128xf32, #tpu.memory_space<vmem>>, vector<1x128xf32>
      %14 = vector.broadcast %13 : vector<1x128xf32> to vector<2x128xf32>
      %15 = arith.addf %12, %14 : vector<2x128xf32>
      %16 = math.tanh %15 : vector<2x128xf32>
      %c0_14 = arith.constant 0 : index
      %c0_15 = arith.constant 0 : index
      %17 = vector.load %arg5[%c0_14, %c0_15] : memref<128x128xf32, #tpu.memory_space<vmem>>, vector<128x128xf32>
      %cst_16 = arith.constant dense<0.000000e+00> : vector<2x128xf32>
      %18 = tpu.matmul %16, %17, %cst_16 {dimension_numbers = #tpu.dot_dimension_numbers<[1], [0], [0], [1], [0, 0, 1, 1], [], []>} : vector<2x128xf32>, vector<128x128xf32>, vector<2x128xf32> -> vector<2x128xf32>
      %c0_17 = arith.constant 0 : index
      %c0_18 = arith.constant 0 : index
      %19 = vector.load %arg6[%c0_17, %c0_18] : memref<1x128xf32, #tpu.memory_space<vmem>>, vector<1x128xf32>
      %20 = vector.broadcast %19 : vector<1x128xf32> to vector<2x128xf32>
      %21 = arith.addf %18, %20 : vector<2x128xf32>
      %c0_19 = arith.constant 0 : index
      %c0_20 = arith.constant 0 : index
      %22 = vector.load %arg7[%c0_19, %c0_20] : memref<2x128xf32, #tpu.memory_space<vmem>>, vector<2x128xf32>
      tpu.vector_store %arg7[%c0_19, %c0_20], %21 {strides = array<i32>} : memref<2x128xf32, #tpu.memory_space<vmem>>, vector<2x128xf32>,
    } else {
    }
    return
  }
  func.func @transform_0(%arg0: i32, %arg1: i32) -> (i32, i32) {
    %c0_i32 = arith.constant 0 : i32
    return %arg0, %arg1 : i32, i32
  }
  func.func @transform_1(%arg0: i32, %arg1: i32) -> (i32, i32) {
    %c0_i32 = arith.constant 0 : i32
    %c0_i32_0 = arith.constant 0 : i32
    return %arg1, %c0_i32 : i32, i32
  }
  func.func @transform_2(%arg0: i32, %arg1: i32) -> (i32, i32) {
    %c0_i32 = arith.constant 0 : i32
    %c0_i32_0 = arith.constant 0 : i32
    %c0_i32_1 = arith.constant 0 : i32
    return %c0_i32, %c0_i32_0 : i32, i32
  }
  func.func @transform_3(%arg0: i32, %arg1: i32) -> (i32, i32) {
    %c0_i32 = arith.constant 0 : i32
    %c0_i32_0 = arith.constant 0 : i32
    %c0_i32_1 = arith.constant 0 : i32
    return %c0_i32, %c0_i32_0 : i32, i32
  }
  func.func @transform_4(%arg0: i32, %arg1: i32) -> (i32, i32) {
    %c0_i32 = arith.constant 0 : i32
    %c0_i32_0 = arith.constant 0 : i32
    %c0_i32_1 = arith.constant 0 : i32
    return %c0_i32, %c0_i32_0 : i32, i32
  }
  func.func @transform_5(%arg0: i32, %arg1: i32) -> (i32, i32) {
    %c0_i32 = arith.constant 0 : i32
    %c0_i32_0 = arith.constant 0 : i32
    return %arg0, %c0_i32 : i32, i32
  }
}

</mosaic_0001>

<bundles_post_ra>
// kernel: tpu_custom_call.1
= control target key start
LH: loop header
LB: loop body
LE: loop exit
PB: predicated region body
PF: predicated region fallthrough
CT: control target
= control target key end

     0   :  { %10 = vsyncpa [#allocation4], 0  ;;  %s348_s0 = inlined_call_operand.hbm [shape: f32[2,128], index: 0, kind: input, shape index: {}]   ;;  %s349_s1 = inlined_call_operand.hbm [shape: f32[128,128], index: 1, kind: input, shape index: {}]   ;;  %s350_s2 = inlined_call_operand.vmem [shape: f32[1,128], index: 2, kind: input, shape index: {}]   ;;  %s351_s3 = inlined_call_operand.hbm [shape: f32[128,128], index: 3, kind: input, shape index: {}]   ;;  %s352_s4 = inlined_call_operand.vmem [shape: f32[1,128], index: 4, kind: input, shape index: {}]   ;;  %s353_s5 = inlined_call_operand.hbm [shape: f32[2,128], index: 5, kind: output, shape index: {}]  }
   0x1   :  { %11 = vsyncpa [#allocation7], 0  ;;  %s28_s20 = sshll.u32 %s349_s1, 4  ;;  %s29_s20 = int_to_ptr.hbm [resolvable:$true] %s28_s20 }
   0x2   :  { %12 = vsyncpa [#allocation5], 0  ;;  %s293_s21 = smov [#allocation6]   ;;  %s18_s25 = sshll.u32 %s348_s0, 4  ;;  %s19_s25 = int_to_ptr.hbm [resolvable:$true] %s18_s25 }
   0x3   :  { %s30_s22 = sshll.u32 %s293_s21, 4  ;;  %s294_s26 = smov 128   ;;  %s31_s22 = int_to_ptr.vmem [resolvable:$true] %s30_s22 }
   0x4   :  { %s295_s27 = smov 8   ;;  %s296_s28 = smov [#allocation3]  }
   0x5   :  { %36 = dma.hbm_to_vmem [thread:$0]  %s29_s20, 2048, %s31_s22, [#allocation7], %s294_s26, %s294_s26, %s295_s27  }
   0x6   :  { %s20_s29 = sshll.u32 %s296_s28, 4  ;;  %s43_s7 = sshll.u32 %s351_s3, 4  ;;  %s21_s29 = int_to_ptr.vmem [resolvable:$true] %s20_s29  ;;  %s44_s7 = int_to_ptr.hbm [resolvable:$true] %s43_s7 }
   0x7   :  { %23 = dma.hbm_to_vmem [thread:$0]  %s19_s25, 32, %s21_s29, [#allocation4]  }
   0x8   :  { %s297_s1 = smov [#allocation8]  }
   0x9   :  { %s45_s8 = sshll.u32 %s297_s1, 4  ;;  %s46_s8 = int_to_ptr.vmem [resolvable:$true] %s45_s8 }
   0xa   :  { %51 = dma.hbm_to_vmem [thread:$0]  %s44_s7, 2048, %s46_s8, [#allocation7], %s294_s26, %s294_s26, %s295_s27  }
   0xb   :  { %287 = dma.done.wait [#allocation4], 32  }
   0xc   :  { %288 = vsyncadd [#allocation4], 4294967264 }
   0xd   :  { %289 = dma.done.wait [#allocation7], 4096  }
   0xe   :  { %290 = vsyncadd [#allocation7], 4294963200  ;;  %v88_v0 = vld [vmem:[#allocation6 + $0x78] sm:$0xff]  ;;  %v87_v1 = vld [vmem:[#allocation6 + $0x70] sm:$0xff]  ;;  %v298_v2 = vmov 0.0   ;;  %s299_s11 = smov [#allocation9]  }
   0xf   :  { %89 = vmatpush.msra.mxu0 %v88_v0  ;;  %70 = vst [vmem:[#allocation2] sm:$0x3] %v298_v2  ;;  %v86_v3 = vld [vmem:[#allocation6 + $0x68] sm:$0xff]  ;;  %v85_v4 = vld [vmem:[#allocation6 + $0x60] sm:$0xff]  ;;  %v136_v5 = vld [vmem:[#allocation8 + $0x78] sm:$0xff]  ;;  %s167_s12 = sshll.u32 %s299_s11, 4  ;;  %s168_s12 = int_to_ptr.vmem [resolvable:$true] %s167_s12 }
  0x10   :  { %v84_v6 = vld [vmem:[#allocation6 + $0x58] sm:$0xff]  ;;  %141 = vmatpush.msra.mxu1 %v136_v5  ;;  %v135_v7 = vld [vmem:[#allocation8 + $0x70] sm:$0xff]  ;;  %v134_v8 = vld [vmem:[#allocation8 + $0x68] sm:$0xff]  ;;  %s169_s15 = sshll.u32 %s353_s5, 4  ;;  %s170_s15 = int_to_ptr.hbm [resolvable:$true] %s169_s15 }
  0x11   :  { %90 = vmatpush.msra.mxu0 %v87_v1  ;;  %v83_v9 = vld [vmem:[#allocation6 + $0x50] sm:$0xff]  ;;  %v133_v10 = vld [vmem:[#allocation8 + $0x60] sm:$0xff]  ;;  %v82_v11 = vld [vmem:[#allocation6 + $0x48] sm:$0xff] }
  0x12   :  { %142 = vmatpush.msra.mxu1 %v135_v7  ;;  %v132_v12 = vld [vmem:[#allocation8 + $0x58] sm:$0xff]  ;;  %v81_v13 = vld [vmem:[#allocation6 + $0x40] sm:$0xff]  ;;  %v131_v14 = vld [vmem:[#allocation8 + $0x50] sm:$0xff] }
  0x13   :  { %91 = vmatpush.msra.mxu0 %v86_v3  ;;  %v80_v15 = vld [vmem:[#allocation6 + $0x38] sm:$0xff]  ;;  %v79_v16 = vld [vmem:[#allocation6 + $0x30] sm:$0xff]  ;;  %v78_v17 = vld [vmem:[#allocation6 + $0x28] sm:$0xff] }
  0x14   :  { %143 = vmatpush.msra.mxu1 %v134_v8  ;;  %v77_v18 = vld [vmem:[#allocation6 + $0x20] sm:$0xff]  ;;  %v76_v19 = vld [vmem:[#allocation6 + $0x18] sm:$0xff]  ;;  %v75_v20 = vld [vmem:[#allocation6 + $0x10] sm:$0xff] }
  0x15   :  { %92 = vmatpush.msra.mxu0 %v85_v4  ;;  %v74_v21 = vld [vmem:[#allocation6 + $0x8] sm:$0xff]  ;;  %v73_v22 = vld [vmem:[#allocation6] sm:$0xff]  ;;  %v71_v23 = vld [vmem:[#allocation3] sm:$0x3] }
  0x16   :  { %144 = vmatpush.msra.mxu1 %v133_v10  ;;  %v130_v24 = vld [vmem:[#allocation8 + $0x48] sm:$0xff]  ;;  %v129_v25 = vld [vmem:[#allocation8 + $0x40] sm:$0xff]  ;;  %v128_v26 = vld [vmem:[#allocation8 + $0x38] sm:$0xff] }
  0x17   :  { %93 = vmatpush.msra.mxu0 %v84_v6  ;;  %v127_v27 = vld [vmem:[#allocation8 + $0x30] sm:$0xff]  ;;  %v126_v28 = vld [vmem:[#allocation8 + $0x28] sm:$0xff]  ;;  %v125_v29 = vld [vmem:[#allocation8 + $0x20] sm:$0xff] }
  0x18   :  { %145 = vmatpush.msra.mxu1 %v132_v12  ;;  %v124_v30 = vld [vmem:[#allocation8 + $0x18] sm:$0xff]  ;;  %v123_v31 = vld [vmem:[#allocation8 + $0x10] sm:$0xff]  ;;  %v122_v32 = vld [vmem:[#allocation8 + $0x8] sm:$0xff] }
  0x19   :  { %94 = vmatpush.msra.mxu0 %v83_v9  ;;  %v121_v33 = vld [vmem:[#allocation8] sm:$0xff]  ;;  %v72_v34 = vld [vmem:[#allocation2] sm:$0x3] }
  0x1a   :  { %146 = vmatpush.msra.mxu1 %v131_v14  ;;  %v187_v37 = vld [vmem:[%s350_s2] ss:$0 sm:$0xff] }
  0x1b   :  { %95 = vmatpush.msra.mxu0 %v82_v11  ;;  %v188_v41 = vld [vmem:[%s352_s4] ss:$0 sm:$0xff] }
  0x1c   :  { %147 = vmatpush.msra.mxu1 %v130_v24 }
  0x1d   :  { %96 = vmatpush.msra.mxu0 %v81_v13 }
  0x1e   :  { %148 = vmatpush.msra.mxu1 %v129_v25 }
  0x1f   :  { %97 = vmatpush.msra.mxu0 %v80_v15 }
  0x20   :  { %149 = vmatpush.msra.mxu1 %v128_v26 }
  0x21   :  { %98 = vmatpush.msra.mxu0 %v79_v16 }
  0x22   :  { %150 = vmatpush.msra.mxu1 %v127_v27 }
  0x23   :  { %99 = vmatpush.msra.mxu0 %v78_v17 }
  0x24   :  { %151 = vmatpush.msra.mxu1 %v126_v28 }
  0x25   :  { %100 = vmatpush.msra.mxu0 %v77_v18 }
  0x26   :  { %152 = vmatpush.msra.mxu1 %v125_v29 }
  0x27   :  { %101 = vmatpush.msra.mxu0 %v76_v19 }
  0x28   :  { %153 = vmatpush.msra.mxu1 %v124_v30 }
  0x29   :  { %102 = vmatpush.msra.mxu0 %v75_v20 }
  0x2a   :  { %154 = vmatpush.msra.mxu1 %v123_v31 }
  0x2b   :  { %103 = vmatpush.msra.mxu0 %v74_v21 }
  0x2c   :  { %155 = vmatpush.msra.mxu1 %v122_v32 }
  0x2d   :  { %104 = vmatpush.msra.mxu0 %v73_v22 }
  0x2e   :  { %105 = vmatmul.f32.vlgmr.msra.gmra.mxu0 %v71_v23  ;;  %156 = vmatpush.msra.mxu1 %v121_v33 }
  0xab   :  { %v106_v35 = vpop.f32.mrf.mxu0 }
  0xac   :  { %v109_v36 = vadd.f32 %v106_v35, %v72_v34 }
  0xae   :  { %110 = vst [vmem:[#allocation2] sm:$0x3] %v109_v36 }
  0xb5   :  { %v114_v38 = vld [vmem:[#allocation2] sm:$0x3] }
  0xb6   :  { %v119_v39 = vadd.f32 %v187_v37, %v114_v38 }
  0xb8   :  { %189 = vtanh.f32 %v119_v39 }
  0xbe   :  { %v190_v40 = vpop.eup %189 }
  0xbf   :  { %157 = vmatmul.f32.vlgmr.msra.gmra.mxu1 %v190_v40 }
 0x13c   :  { %v158_v42 = vpop.f32.mrf.mxu1 }
 0x13d   :  { %v159_v43 = vadd.f32 %v188_v41, %v158_v42 }
 0x13f   :  { %161 = vst [vmem:[#allocation9] sm:$0x3] %v159_v43 }
 0x140   :  { %172 = dma.vmem_to_hbm [thread:$0]  %s168_s12, 32, %s170_s15, [#allocation5]  }
 0x141   :  { %291 = dma.done.wait [#allocation5], 32  }
 0x142   :  { %292 = vsyncadd [#allocation5], 4294967264 }
 0x143   :  { %177 = vsyncpa [#allocation4], 1 }
 0x144   :  { %178 = vsyncpa [#allocation7], 1 }
 0x145   :  { %179 = vsyncpa [#allocation5], 1 }

</bundles_post_ra>
